<compile_context>
chip_gen: v5e
topology: v5e:2x2
jax: 0.10.0
libtpu: 0.0.40
codegen_flags: <defaults>
</compile_context>

<pallas_src>
import functools

import jax
import jax.numpy as jnp
from jax import lax
from jax.experimental import pallas as pl
from jax.experimental.pallas import tpu as pltpu


def _round_up(x, m):
    return ((x + m - 1) // m) * m


# ----------------------------------------------------------------------------
# Pallas kernel
# ----------------------------------------------------------------------------
def neumf_kernel(dim, hidden_dims, n_items, *refs):
    """Fused NeuMF scoring for one batch tile of tile_b rows.

    refs = (u_pack,                        # (tile_b, 2*dim)  [u_mf | u_mlp], bf16
            i_pack_0, ..., i_pack_{n-1},   # (tile_b, 2*dim)  [i_mf | i_mlp], bf16
            w0_u, w0_i,                    # (2*dim, h0) zero-padded 1st-layer weights
            w_1, ..., w_{L-1},             # remaining MLP layer weights
            const_pack,                    # (1, C) = [b_0|..|b_{L-1}|wf_mf|wf_mlp|bf]
            out)                           # (n_items, tile_b) lane-dense scores
    """
    L = len(hidden_dims)
    u_ref = refs[0]
    item_refs = refs[1:1 + n_items]
    idx = 1 + n_items
    w0u_ref, w0i_ref = refs[idx], refs[idx + 1]
    idx += 2
    rest_w_refs = refs[idx:idx + (L - 1)]
    idx += L - 1
    const_ref = refs[idx]
    out_ref = refs[idx + 1]

    # Static lane offsets into the packed constant row.
    off = 0
    biases = []
    for h in hidden_dims:
        biases.append(const_ref[:, off:off + h])           # (1, h)
        off += h
    wf_mf = const_ref[:, off:off + dim]                    # (1, dim)
    off += dim
    wf_mlp = const_ref[:, off:off + hidden_dims[-1]]       # (1, h_last)
    off += hidden_dims[-1]
    bf = const_ref[:, off:off + 1]                         # (1, 1)

    # Shared user-side work: computed once per tile, reused for every item slot.
    u_f32 = u_ref[...].astype(jnp.float32)                 # (tile_b, 2*dim)
    u_mf = u_f32[:, :dim]                                  # (tile_b, dim)
    # First MLP layer, user half: contracts the full packed width; the
    # zero-padded weight rows kill the u_mf lanes (no in-kernel concat).
    u_hidden = jnp.dot(u_f32, w0u_ref[...],
                       preferred_element_type=jnp.float32)  # (tile_b, h0)

    dn = (((1,), (1,)), ((), ()))  # contract the feature dim of both operands
    scores = []
    for j in range(n_items):
        it_f32 = item_refs[j][...].astype(jnp.float32)     # (tile_b, 2*dim)
        # GMF branch: elementwise product in f32 (v5e has no bf16 VPU).
        mf_vec = u_mf * it_f32[:, :dim]                    # (tile_b, dim)
        # MLP branch: shared user half + item half (zero-padded weight).
        x = u_hidden + jnp.dot(it_f32, w0i_ref[...],
                               preferred_element_type=jnp.float32) + biases[0]
        x = jnp.maximum(x, 0.0)
        for l in range(1, L):
            x = jnp.dot(x, rest_w_refs[l - 1][...],
                        preferred_element_type=jnp.float32) + biases[l]
            x = jnp.maximum(x, 0.0)
        # Final layer: concat([mf, x]) @ wf + bf, as two split dots contracting
        # the feature dim -> lane-dense (1, tile_b) (no concat / masked store).
        s = lax.dot_general(wf_mf, mf_vec, dn, preferred_element_type=jnp.float32)
        s = s + lax.dot_general(wf_mlp, x, dn, preferred_element_type=jnp.float32)
        scores.append(s + bf)                              # (1, tile_b)

    out_ref[...] = jnp.concatenate(scores, axis=0).astype(out_ref.dtype)


# ----------------------------------------------------------------------------
# Wrapper: gathers (glue) + pallas_call
# ----------------------------------------------------------------------------
def _neumf_scores(params, users, item_lists, *, tile_b=512):
    """Scores one user index vector against n_items aligned item index vectors.

    Returns float32 (n_items, n). The user side (gather + first-layer matmul)
    is shared across all item lists (de-duplicated pos/neg).
    """
    user_emb = params["user_emb"]
    item_emb = params["item_emb"]
    dim = user_emb.shape[1] // 2
    mlp_ws, mlp_bs = params["mlp_ws"], params["mlp_bs"]
    hidden_dims = tuple(int(w.shape[1]) for w in mlp_ws)
    h_last = hidden_dims[-1]
    wf, bf = params["final_w"], params["final_b"]
    assert wf.shape[0] == dim + h_last, (
        "final layer width only matches the NeuMF spec when num_hidden_layer==1")

    n = int(users.shape[0])
    n_items = len(item_lists)
    assert tile_b % 128 == 0
    # Clamp the tile for small batches; keep it a multiple of 128 so the
    # (n_items, tile_b) output blocks stay lane-dense / (8,128)-compliant.
    # (On v7x, large batches give >= 2 grid steps so both TensorCores work.)
    tile_b = min(tile_b, _round_up(max(n, 1), 128))
    n_pad = _round_up(n, tile_b)
    pad = n_pad - n

    def pad_idx(idx):
        return jnp.concatenate([idx, jnp.zeros((pad,), idx.dtype)]) if pad else idx

    users_p = pad_idx(users)
    items_p = [pad_idx(it) for it in item_lists]

    # Embedding lookups (gather) done in plain JAX as glue, from the packed
    # [MF | MLP] bf16 tables: one gather per entity instead of two.
    # TODO(synk): fuse the gathers into the kernel (scalar-prefetched indices +
    # manual DMA from the HBM tables) to avoid materializing gathered rows.
    u_pack = user_emb[users_p]                              # (n_pad, 2*dim) bf16
    i_packs = [item_emb[it] for it in items_p]              # n_items x (n_pad, 2*dim)

    # First MLP layer weights, zero-padded so each packed 2*dim row feeds one
    # full-width MXU contraction (no in-kernel concat or extra lane slicing).
    w0 = mlp_ws[0]                                          # (2*dim, h0)
    zeros_d = jnp.zeros((dim, hidden_dims[0]), jnp.float32)
    w0_u = jnp.concatenate([zeros_d, w0[:dim]], axis=0)     # rows for [u_mf|u_mlp]
    w0_i = jnp.concatenate([zeros_d, w0[dim:]], axis=0)     # rows for [i_mf|i_mlp]

    # Collapse all tiny (1, x) constants into one lane-padded row.
    const_pack = jnp.concatenate(
        [b.reshape(1, -1) for b in mlp_bs]
        + [wf[:dim, :].T, wf[dim:, :].T, bf.reshape(1, 1)], axis=1)
    c = const_pack.shape[1]
    const_pack = jnp.pad(const_pack, ((0, 0), (0, _round_up(c, 128) - c)))

    batch_spec = pl.BlockSpec((tile_b, 2 * dim), lambda i: (i, 0))

    def full_spec(arr):
        return pl.BlockSpec(arr.shape, lambda i: (0,) * arr.ndim)

    inputs = [u_pack] + i_packs + [w0_u, w0_i] + list(mlp_ws[1:]) + [const_pack]
    in_specs = ([batch_spec] * (1 + n_items)
                + [full_spec(w0_u), full_spec(w0_i)]
                + [full_spec(w) for w in mlp_ws[1:]]
                + [full_spec(const_pack)])

    kernel = functools.partial(neumf_kernel, dim, hidden_dims, n_items)
    out = pl.pallas_call(
        kernel,
        out_shape=jax.ShapeDtypeStruct((n_items, n_pad), jnp.float32),
        grid=(n_pad // tile_b,),
        in_specs=in_specs,
        out_specs=pl.BlockSpec((n_items, tile_b), lambda i: (0, i)),
        compiler_params=pltpu.CompilerParams(
            dimension_semantics=("parallel",)),
    )(*inputs)
    return out[:, :n]


def neumf_forward_no_neg(params, batch_user, batch_item, *, tile_b=512):
    out = _neumf_scores(params, batch_user, [batch_item], tile_b=tile_b)
    return out[0][:, None]


def neumf_forward(params, batch_user, batch_pos_item, batch_neg_item, *, tile_b=512):
    # Single pallas_call scores pos and neg; the user tile is read/used once.
    out = _neumf_scores(params, batch_user, [batch_pos_item, batch_neg_item],
                        tile_b=tile_b)
    return out[0][:, None], out[1][:, None]


# ----------------------------------------------------------------------------
# Deterministic parameter init (mirrors NeuMF.__init__ shapes)
# ----------------------------------------------------------------------------
def _xavier_uniform(key, shape):
    fan_in, fan_out = shape  # stored as (in, out)
    limit = (6.0 / (fan_in + fan_out)) ** 0.5
    return jax.random.uniform(key, shape, jnp.float32, -limit, limit)


def _kaiming_uniform(key, shape, a=1.0):
    fan_in = shape[0]  # stored as (in, out)
    gain = (2.0 / (1.0 + a * a)) ** 0.5
    bound = gain * (3.0 / fan_in) ** 0.5
    return jax.random.uniform(key, shape, jnp.float32, -bound, bound)


def init_params(key, user_count, item_count, dim, num_hidden_layer):
    keys = jax.random.split(key, 5 + num_hidden_layer)
    user_mf = 0.01 * jax.random.normal(keys[0], (user_count, dim), jnp.float32)
    item_mf = 0.01 * jax.random.normal(keys[1], (item_count, dim), jnp.float32)
    user_mlp = 0.01 * jax.random.normal(keys[2], (user_count, dim), jnp.float32)
    item_mlp = 0.01 * jax.random.normal(keys[3], (item_count, dim), jnp.float32)
    params = {
        # Packed [MF | MLP] tables in bf16: one gather per entity, half the
        # HBM bytes on the streamed embedding rows (accumulation stays f32).
        "user_emb": jnp.concatenate([user_mf, user_mlp], axis=-1).astype(jnp.bfloat16),
        "item_emb": jnp.concatenate([item_mf, item_mlp], axis=-1).astype(jnp.bfloat16),
    }
    layers_shape = [dim * 2]
    mlp_ws, mlp_bs = [], []
    for li in range(num_hidden_layer):
        layers_shape.append(layers_shape[-1] // 2)
        in_f, out_f = layers_shape[-2], layers_shape[-1]
        mlp_ws.append(_xavier_uniform(keys[4 + li], (in_f, out_f)))  # (in, out)
        mlp_bs.append(jnp.zeros((1, out_f), jnp.float32))
    params["mlp_ws"] = mlp_ws
    params["mlp_bs"] = mlp_bs
    # final_layer: Linear(layers_shape[-1] * 2, 1), like the PyTorch module.
    final_in = layers_shape[-1] * 2
    params["final_w"] = _kaiming_uniform(keys[-1], (final_in, 1), a=1.0)
    params["final_b"] = jnp.zeros((1, 1), jnp.float32)
    return params


# ----------------------------------------------------------------------------
# Pure-JAX reference (for correctness check)
# ----------------------------------------------------------------------------
def neumf_ref_no_neg(params, batch_user, batch_item):
    dim = params["user_emb"].shape[1] // 2
    u = params["user_emb"][batch_user].astype(jnp.float32)
    it = params["item_emb"][batch_item].astype(jnp.float32)
    mf_vector = u[:, :dim] * it[:, :dim]
    x = jnp.concatenate([u[:, dim:], it[:, dim:]], axis=-1)
    for w, b in zip(params["mlp_ws"], params["mlp_bs"]):
        x = jnp.maximum(x @ w + b, 0.0)
    pv = jnp.concatenate([mf_vector, x], axis=-1)
    return pv @ params["final_w"] + params["final_b"]


if __name__ == "__main__":
    # NOTE: the original module's final_layer takes layers_shape[-1]*2 inputs,
    # which only matches concat([mf (dim), mlp (dim/2**n)]) when
    # num_hidden_layer == 1; we use that consistent configuration.
    user_count, item_count, dim, num_hidden_layer = 64, 80, 32, 1
    batch_size = 16

    key = jax.random.PRNGKey(0)
    k_params, k_u, k_p, k_n = jax.random.split(key, 4)
    params = init_params(k_params, user_count, item_count, dim, num_hidden_layer)

    batch_user = jax.random.randint(k_u, (batch_size,), 0, user_count, dtype=jnp.int32)
    batch_pos_item = jax.random.randint(k_p, (batch_size,), 0, item_count, dtype=jnp.int32)
    batch_neg_item = jax.random.randint(k_n, (batch_size,), 0, item_count, dtype=jnp.int32)

    pos_score, neg_score = neumf_forward(params, batch_user, batch_pos_item, batch_neg_item)
    jax.block_until_ready((pos_score, neg_score))

    # Correctness check against the pure-JAX reference (same bf16 tables,
    # f32 math in both -> only accumulation-order differences remain).
    pos_ref = neumf_ref_no_neg(params, batch_user, batch_pos_item)
    neg_ref = neumf_ref_no_neg(params, batch_user, batch_neg_item)
    assert pos_score.shape == (batch_size, 1) and neg_score.shape == (batch_size, 1)
    assert jnp.allclose(pos_score, pos_ref, atol=3e-5, rtol=1e-4)
    assert jnp.allclose(neg_score, neg_ref, atol=3e-5, rtol=1e-4)

    # Also exercise the single-item scoring path.
    single = neumf_forward_no_neg(params, batch_user, batch_pos_item)
    jax.block_until_ready(single)
    assert jnp.allclose(single, pos_ref, atol=3e-5, rtol=1e-4)

    print("KERNEL_OK")
</pallas_src>

<mosaic_0001>
module attributes {stable_mosaic.version = 11 : i64} {
  func.func @neumf_kernel(%arg0: i32, %arg1: memref<128x64xbf16, #tpu.memory_space<vmem>>, %arg2: memref<128x64xbf16, #tpu.memory_space<vmem>>, %arg3: memref<128x64xbf16, #tpu.memory_space<vmem>>, %arg4: memref<64x32xf32, #tpu.memory_space<vmem>>, %arg5: memref<64x32xf32, #tpu.memory_space<vmem>>, %arg6: memref<1x128xf32, #tpu.memory_space<vmem>>, %arg7: memref<2x128xf32, #tpu.memory_space<vmem>>) attributes {dimension_semantics = [#tpu.dimension_semantics<parallel>], iteration_bounds = array<i64: 1>, scalar_prefetch = 0 : i64, scratch_operands = 0 : i64, tpu.core_type = #tpu.core_type<tc>, window_params = [{transform_indices = @transform_0, window_bounds = array<i64: 128, 64>}, {transform_indices = @transform_1, window_bounds = array<i64: 128, 64>}, {transform_indices = @transform_2, window_bounds = array<i64: 128, 64>}, {pipeline_mode = #tpu.pipeline_mode<synchronous>, transform_indices = @transform_3, window_bounds = array<i64: 64, 32>}, {pipeline_mode = #tpu.pipeline_mode<synchronous>, transform_indices = @transform_4, window_bounds = array<i64: 64, 32>}, {pipeline_mode = #tpu.pipeline_mode<synchronous>, transform_indices = @transform_5, window_bounds = array<i64: 1, 128>}, {transform_indices = @transform_6, window_bounds = array<i64: 2, 128>}]} {
    %c0 = arith.constant 0 : index
    %c0_0 = arith.constant 0 : index
    %0 = vector.load %arg6[%c0, %c0_0] : memref<1x128xf32, #tpu.memory_space<vmem>>, vector<1x32xf32>
    %c0_1 = arith.constant 0 : index
    %c32 = arith.constant 32 : index
    %1 = vector.load %arg6[%c0_1, %c32] : memref<1x128xf32, #tpu.memory_space<vmem>>, vector<1x32xf32>
    %c0_2 = arith.constant 0 : index
    %c64 = arith.constant 64 : index
    %2 = vector.load %arg6[%c0_2, %c64] : memref<1x128xf32, #tpu.memory_space<vmem>>, vector<1x32xf32>
    %c0_3 = arith.constant 0 : index
    %c96 = arith.constant 96 : index
    %3 = vector.load %arg6[%c0_3, %c96] : memref<1x128xf32, #tpu.memory_space<vmem>>, vector<1x1xf32>
    %c0_4 = arith.constant 0 : index
    %c0_5 = arith.constant 0 : index
    %4 = vector.load %arg1[%c0_4, %c0_5] : memref<128x64xbf16, #tpu.memory_space<vmem>>, vector<128x64xbf16>
    %5 = arith.extf %4 : vector<128x64xbf16> to vector<128x64xf32>
    %6 = vector.extract_strided_slice %5 {offsets = [0, 0], sizes = [128, 32], strides = [1, 1]} : vector<128x64xf32> to vector<128x32xf32>
    %c0_6 = arith.constant 0 : index
    %c0_7 = arith.constant 0 : index
    %7 = vector.load %arg4[%c0_6, %c0_7] : memref<64x32xf32, #tpu.memory_space<vmem>>, vector<64x32xf32>
    %cst = arith.constant dense<0.000000e+00> : vector<128x32xf32>
    %8 = tpu.matmul %5, %7, %cst {dimension_numbers = #tpu.dot_dimension_numbers<[1], [0], [0], [1], [0, 0, 1, 1], [], []>} : vector<128x64xf32>, vector<64x32xf32>, vector<128x32xf32> -> vector<128x32xf32>
    %c0_8 = arith.constant 0 : index
    %c0_9 = arith.constant 0 : index
    %9 = vector.load %arg2[%c0_8, %c0_9] : memref<128x64xbf16, #tpu.memory_space<vmem>>, vector<128x64xbf16>
    %10 = arith.extf %9 : vector<128x64xbf16> to vector<128x64xf32>
    %11 = vector.extract_strided_slice %10 {offsets = [0, 0], sizes = [128, 32], strides = [1, 1]} : vector<128x64xf32> to vector<128x32xf32>
    %12 = arith.mulf %6, %11 : vector<128x32xf32>
    %c0_10 = arith.constant 0 : index
    %c0_11 = arith.constant 0 : index
    %13 = vector.load %arg5[%c0_10, %c0_11] : memref<64x32xf32, #tpu.memory_space<vmem>>, vector<64x32xf32>
    %cst_12 = arith.constant dense<0.000000e+00> : vector<128x32xf32>
    %14 = tpu.matmul %10, %13, %cst_12 {dimension_numbers = #tpu.dot_dimension_numbers<[1], [0], [0], [1], [0, 0, 1, 1], [], []>} : vector<128x64xf32>, vector<64x32xf32>, vector<128x32xf32> -> vector<128x32xf32>
    %15 = arith.addf %8, %14 : vector<128x32xf32>
    %16 = vector.broadcast %0 : vector<1x32xf32> to vector<128x32xf32>
    %17 = arith.addf %15, %16 : vector<128x32xf32>
    %cst_13 = arith.constant 0.000000e+00 : f32
    %18 = vector.broadcast %cst_13 : f32 to vector<128x32xf32>
    %19 = arith.maximumf %17, %18 : vector<128x32xf32>
    %cst_14 = arith.constant dense<0.000000e+00> : vector<1x128xf32>
    %20 = tpu.matmul %1, %12, %cst_14 {dimension_numbers = #tpu.dot_dimension_numbers<[1], [1], [0], [0], [0, 0, 1, 0], [], []>} : vector<1x32xf32>, vector<128x32xf32>, vector<1x128xf32> -> vector<1x128xf32>
    %cst_15 = arith.constant dense<0.000000e+00> : vector<1x128xf32>
    %21 = tpu.matmul %2, %19, %cst_15 {dimension_numbers = #tpu.dot_dimension_numbers<[1], [1], [0], [0], [0, 0, 1, 0], [], []>} : vector<1x32xf32>, vector<128x32xf32>, vector<1x128xf32> -> vector<1x128xf32>
    %22 = arith.addf %20, %21 : vector<1x128xf32>
    %23 = vector.broadcast %3 : vector<1x1xf32> to vector<1x128xf32>
    %24 = arith.addf %22, %23 : vector<1x128xf32>
    %c0_16 = arith.constant 0 : index
    %c0_17 = arith.constant 0 : index
    %25 = vector.load %arg3[%c0_16, %c0_17] : memref<128x64xbf16, #tpu.memory_space<vmem>>, vector<128x64xbf16>
    %26 = arith.extf %25 : vector<128x64xbf16> to vector<128x64xf32>
    %27 = vector.extract_strided_slice %26 {offsets = [0, 0], sizes = [128, 32], strides = [1, 1]} : vector<128x64xf32> to vector<128x32xf32>
    %28 = arith.mulf %6, %27 : vector<128x32xf32>
    %c0_18 = arith.constant 0 : index
    %c0_19 = arith.constant 0 : index
    %29 = vector.load %arg5[%c0_18, %c0_19] : memref<64x32xf32, #tpu.memory_space<vmem>>, vector<64x32xf32>
    %cst_20 = arith.constant dense<0.000000e+00> : vector<128x32xf32>
    %30 = tpu.matmul %26, %29, %cst_20 {dimension_numbers = #tpu.dot_dimension_numbers<[1], [0], [0], [1], [0, 0, 1, 1], [], []>} : vector<128x64xf32>, vector<64x32xf32>, vector<128x32xf32> -> vector<128x32xf32>
    %31 = arith.addf %8, %30 : vector<128x32xf32>
    %32 = vector.broadcast %0 : vector<1x32xf32> to vector<128x32xf32>
    %33 = arith.addf %31, %32 : vector<128x32xf32>
    %cst_21 = arith.constant 0.000000e+00 : f32
    %34 = vector.broadcast %cst_21 : f32 to vector<128x32xf32>
    %35 = arith.maximumf %33, %34 : vector<128x32xf32>
    %cst_22 = arith.constant dense<0.000000e+00> : vector<1x128xf32>
    %36 = tpu.matmul %1, %28, %cst_22 {dimension_numbers = #tpu.dot_dimension_numbers<[1], [1], [0], [0], [0, 0, 1, 0], [], []>} : vector<1x32xf32>, vector<128x32xf32>, vector<1x128xf32> -> vector<1x128xf32>
    %cst_23 = arith.constant dense<0.000000e+00> : vector<1x128xf32>
    %37 = tpu.matmul %2, %35, %cst_23 {dimension_numbers = #tpu.dot_dimension_numbers<[1], [1], [0], [0], [0, 0, 1, 0], [], []>} : vector<1x32xf32>, vector<128x32xf32>, vector<1x128xf32> -> vector<1x128xf32>
    %38 = arith.addf %36, %37 : vector<1x128xf32>
    %39 = vector.broadcast %3 : vector<1x1xf32> to vector<1x128xf32>
    %40 = arith.addf %38, %39 : vector<1x128xf32>
    %41 = tpu.concatenate %24, %40 in 0 : vector<1x128xf32>, vector<1x128xf32> -> vector<2x128xf32>
    %c0_24 = arith.constant 0 : index
    %c0_25 = arith.constant 0 : index
    %42 = vector.load %arg7[%c0_24, %c0_25] : memref<2x128xf32, #tpu.memory_space<vmem>>, vector<2x128xf32>
    tpu.vector_store %arg7[%c0_24, %c0_25], %41 {strides = array<i32>} : memref<2x128xf32, #tpu.memory_space<vmem>>, vector<2x128xf32>,
    return
  }
  func.func @transform_0(%arg0: i32) -> (i32, i32) {
    %c0_i32 = arith.constant 0 : i32
    %c0_i32_0 = arith.constant 0 : i32
    return %arg0, %c0_i32 : i32, i32
  }
  func.func @transform_1(%arg0: i32) -> (i32, i32) {
    %c0_i32 = arith.constant 0 : i32
    %c0_i32_0 = arith.constant 0 : i32
    return %arg0, %c0_i32 : i32, i32
  }
  func.func @transform_2(%arg0: i32) -> (i32, i32) {
    %c0_i32 = arith.constant 0 : i32
    %c0_i32_0 = arith.constant 0 : i32
    return %arg0, %c0_i32 : i32, i32
  }
  func.func @transform_3(%arg0: i32) -> (i32, i32) {
    %c0_i32 = arith.constant 0 : i32
    %c0_i32_0 = arith.constant 0 : i32
    %c0_i32_1 = arith.constant 0 : i32
    return %c0_i32, %c0_i32_0 : i32, i32
  }
  func.func @transform_4(%arg0: i32) -> (i32, i32) {
    %c0_i32 = arith.constant 0 : i32
    %c0_i32_0 = arith.constant 0 : i32
    %c0_i32_1 = arith.constant 0 : i32
    return %c0_i32, %c0_i32_0 : i32, i32
  }
  func.func @transform_5(%arg0: i32) -> (i32, i32) {
    %c0_i32 = arith.constant 0 : i32
    %c0_i32_0 = arith.constant 0 : i32
    %c0_i32_1 = arith.constant 0 : i32
    return %c0_i32, %c0_i32_0 : i32, i32
  }
  func.func @transform_6(%arg0: i32) -> (i32, i32) {
    %c0_i32 = arith.constant 0 : i32
    %c0_i32_0 = arith.constant 0 : i32
    return %c0_i32, %arg0 : i32, i32
  }
}

</mosaic_0001>

<bundles_post_ra>
// kernel: tpu_custom_call.1
= control target key start
LH: loop header
LB: loop body
LE: loop exit
PB: predicated region body
PF: predicated region fallthrough
CT: control target
= control target key end

     0   :  { %s1837_s0 = inlined_call_operand.vmem [shape: bf16[128,64], index: 0, kind: input, shape index: {}]   ;;  %s1838_s1 = inlined_call_operand.vmem [shape: bf16[128,64], index: 1, kind: input, shape index: {}]   ;;  %s1839_s2 = inlined_call_operand.vmem [shape: bf16[128,64], index: 2, kind: input, shape index: {}]   ;;  %s1840_s3 = inlined_call_operand.vmem [shape: f32[64,32], index: 3, kind: input, shape index: {}]   ;;  %s1841_s4 = inlined_call_operand.vmem [shape: f32[64,32], index: 4, kind: input, shape index: {}]   ;;  %s1842_s5 = inlined_call_operand.vmem [shape: f32[1,128], index: 5, kind: input, shape index: {}]   ;;  %s1843_s6 = inlined_call_operand.hbm [shape: f32[2,128], index: 6, kind: output, shape index: {}]  }
   0x1   :  { %v64_v0 = vld [vmem:[%s1840_s3 + $0x38] sm:$0xff]  ;;  %v63_v2 = vld [vmem:[%s1840_s3 + $0x30] sm:$0xff]  ;;  %v62_v4 = vld [vmem:[%s1840_s3 + $0x28] sm:$0xff] }
   0x2   :  { %v234_v1 = vld [vmem:[%s1841_s4 + $0x38] sm:$0xff]  ;;  %122 = vmatpush.msra.mxu0 %v64_v0  ;;  %v233_v3 = vld [vmem:[%s1841_s4 + $0x30] sm:$0xff]  ;;  %v232_v5 = vld [vmem:[%s1841_s4 + $0x28] sm:$0xff] }
   0x3   :  { %291 = vmatpush.msra.mxu1 %v234_v1  ;;  %654 = vmatpush.msra.mxu2 %v234_v1  ;;  %v61_v6 = vld [vmem:[%s1840_s3 + $0x20] sm:$0xff]  ;;  %v60_v8 = vld [vmem:[%s1840_s3 + $0x18] sm:$0xff] }
   0x4   :  { %123 = vmatpush.msra.mxu0 %v63_v2  ;;  %v231_v7 = vld [vmem:[%s1841_s4 + $0x20] sm:$0xff]  ;;  %v230_v9 = vld [vmem:[%s1841_s4 + $0x18] sm:$0xff] }
   0x5   :  { %292 = vmatpush.msra.mxu1 %v233_v3  ;;  %655 = vmatpush.msra.mxu2 %v233_v3 }
   0x6   :  { %124 = vmatpush.msra.mxu0 %v62_v4 }
   0x7   :  { %293 = vmatpush.msra.mxu1 %v232_v5  ;;  %656 = vmatpush.msra.mxu2 %v232_v5 }
   0x8   :  { %125 = vmatpush.msra.mxu0 %v61_v6 }
   0x9   :  { %294 = vmatpush.msra.mxu1 %v231_v7 }
   0xa   :  { %11 = vsyncpa [#allocation3], 0  ;;  %657 = vmatpush.msra.mxu2 %v231_v7  ;;  %v59_v10 = vld [vmem:[%s1840_s3 + $0x10] sm:$0xff]  ;;  %126 = vmatpush.msra.mxu0 %v60_v8  ;;  %v58_v12 = vld [vmem:[%s1840_s3 + $0x8] sm:$0xff]  ;;  %vm65_vm0 = vcmask 523264   ;;  %s1184_s21 = smov 96  }
   0xb   :  { %v229_v11 = vld [vmem:[%s1841_s4 + $0x10] sm:$0xff]  ;;  %295 = vmatpush.msra.mxu1 %v230_v9  ;;  %v1035_v13 = vld [vmem:[%s1837_s0] sm:$0xff]   ;;  %v228_v14 = vld [vmem:[%s1841_s4 + $0x8] sm:$0xff]  ;;  %s1185_s28 = smov 64   ;;  %vm401_vm1 = vcmask 261120   ;;  %s909_s7 = sshll.u32 %s1843_s6, 4  ;;  %s910_s7 = int_to_ptr.hbm [resolvable:$true] %s909_s7 }
   0xc   :  { %658 = vmatpush.msra.mxu2 %v230_v9  ;;  %v1271_v15 = vld [vmem:[%s1838_s1] sm:$0xff]   ;;  %127 = vmatpush.msra.mxu0 %v59_v10  ;;  %v1284_v19 = vunpack.c.l.bf16 %v1035_v13  ;;  %v1296_v22 = vunpack.c.h.bf16 %v1035_v13  ;;  %v1130_v25 = vld [vmem:[%s1837_s0 + $0x8] sm:$0xff]   ;;  %v1131_v34 = vld [vmem:[%s1837_s0 + $0x10] sm:$0xff]   ;;  %vm899_vm2 = vcmask 1040384  }
   0xd   :  { %v1276_v16 = vld [vmem:[%s1839_s2] sm:$0xff]   ;;  %296 = vmatpush.msra.mxu1 %v229_v11  ;;  %v1858_v20 = vunpack.c.l.bf16 %v1271_v15  ;;  %v1860_v23 = vunpack.c.h.bf16 %v1271_v15  ;;  %v1314_v26 = vld [vmem:[%s1838_s1 + $0x8] sm:$0xff]   ;;  %v1321_v28 = vunpack.c.l.bf16 %v1130_v25  ;;  %v1333_v31 = vunpack.c.h.bf16 %v1130_v25  ;;  %v1351_v35 = vld [vmem:[%s1838_s1 + $0x10] sm:$0xff]  }
   0xe   :  { %659 = vmatpush.msra.mxu2 %v229_v11  ;;  %v57_v17 = vld [vmem:[%s1840_s3] sm:$0xff]  ;;  %128 = vmatpush.msra.mxu0 %v58_v12  ;;  %v1844_v21 = vunpack.c.l.bf16 %v1276_v16  ;;  %v1845_v24 = vunpack.c.h.bf16 %v1276_v16  ;;  %v1319_v27 = vld [vmem:[%s1839_s2 + $0x8] sm:$0xff]   ;;  %v1862_v29 = vunpack.c.l.bf16 %v1314_v26  ;;  %v1863_v32 = vunpack.c.h.bf16 %v1314_v26  ;;  %v1356_v36 = vld [vmem:[%s1839_s2 + $0x10] sm:$0xff]  }
   0xf   :  { %v227_v18 = vld [vmem:[%s1841_s4] sm:$0xff]  ;;  %297 = vmatpush.msra.mxu1 %v228_v14  ;;  %v1846_v30 = vunpack.c.l.bf16 %v1319_v27  ;;  %v1847_v33 = vunpack.c.h.bf16 %v1319_v27  ;;  %v1358_v37 = vunpack.c.l.bf16 %v1131_v34  ;;  %v1864_v38 = vunpack.c.l.bf16 %v1351_v35  ;;  %v1132_v43 = vld [vmem:[%s1837_s0 + $0x18] sm:$0xff]   ;;  %v1134_v61 = vld [vmem:[%s1837_s0 + $0x28] sm:$0xff]  }
  0x10   :  { %660 = vmatpush.msra.mxu2 %v228_v14  ;;  %129 = vmatpush.msra.mxu0 %v57_v17  ;;  %v1848_v39 = vunpack.c.l.bf16 %v1356_v36  ;;  %v1370_v40 = vunpack.c.h.bf16 %v1131_v34  ;;  %v1077_v41 = vunpack.c.h.bf16 %v1351_v35  ;;  %v1849_v42 = vunpack.c.h.bf16 %v1356_v36  ;;  %v1388_v44 = vld [vmem:[%s1838_s1 + $0x18] sm:$0xff]   ;;  %v1133_v52 = vld [vmem:[%s1837_s0 + $0x20] sm:$0xff]   ;;  %v1462_v62 = vld [vmem:[%s1838_s1 + $0x28] sm:$0xff]  }
  0x11   :  { %298 = vmatpush.msra.mxu1 %v227_v18  ;;  %918 = vmatmul.msk.f32.vlgmr.msra.gmra.mxu0 %vm65_vm0, %v1284_v19  ;;  %v1393_v45 = vld [vmem:[%s1839_s2 + $0x18] sm:$0xff]   ;;  %v1395_v46 = vunpack.c.l.bf16 %v1132_v43  ;;  %v1080_v47 = vunpack.c.l.bf16 %v1388_v44  ;;  %v1407_v49 = vunpack.c.h.bf16 %v1132_v43  ;;  %v1081_v50 = vunpack.c.h.bf16 %v1388_v44  ;;  %v1425_v53 = vld [vmem:[%s1838_s1 + $0x20] sm:$0xff]   ;;  %v1467_v63 = vld [vmem:[%s1839_s2 + $0x28] sm:$0xff]  }
  0x12   :  { %661 = vmatpush.msra.mxu2 %v227_v18  ;;  %934 = vmatmul.msk.f32.vlgmr.msra.gmra.mxu1 %vm65_vm0, %v1858_v20  ;;  %v1850_v48 = vunpack.c.l.bf16 %v1393_v45  ;;  %v1851_v51 = vunpack.c.h.bf16 %v1393_v45  ;;  %v1430_v54 = vld [vmem:[%s1839_s2 + $0x20] sm:$0xff]   ;;  %v1432_v55 = vunpack.c.l.bf16 %v1133_v52  ;;  %v1084_v56 = vunpack.c.l.bf16 %v1425_v53  ;;  %v1135_v6 = vld [vmem:[%s1837_s0 + $0x30] sm:$0xff]   ;;  %v1136_v18 = vld [vmem:[%s1837_s0 + $0x38] sm:$0xff]  }
  0x13   :  { %984 = vmatmul.msk.f32.vlgmr.msra.gmra.mxu2 %vm65_vm0, %v1844_v21  ;;  %v1852_v57 = vunpack.c.l.bf16 %v1430_v54  ;;  %v1444_v58 = vunpack.c.h.bf16 %v1133_v52  ;;  %v1085_v59 = vunpack.c.h.bf16 %v1425_v53  ;;  %v1853_v60 = vunpack.c.h.bf16 %v1430_v54  ;;  %v1499_v7 = vld [vmem:[%s1838_s1 + $0x30] sm:$0xff]   ;;  %v1515_v12 = vld [vmem:[%s1842_s5] ss:$0 sm:$0xff]  ;;  %v1143_v25 = vld [vmem:[%s1838_s1 + $0x38] sm:$0xff]  }
  0x14   :  { %v1469_v0 = vunpack.c.l.bf16 %v1134_v61  ;;  %v1088_v1 = vunpack.c.l.bf16 %v1462_v62  ;;  %v1854_v2 = vunpack.c.l.bf16 %v1467_v63  ;;  %v1481_v3 = vunpack.c.h.bf16 %v1134_v61  ;;  %v1504_v8 = vld [vmem:[%s1839_s2 + $0x30] sm:$0xff]   ;;  %472 = vrot.lane.b32.xlu0 %v1515_v12, %s1184_s21  ;;  %v1543_v34 = vld [vmem:[%s1839_s2 + $0x38] sm:$0xff]   ;;  %s1187_s2 = smov [#allocation2]  }
  0x15   :  { %v1089_v4 = vunpack.c.h.bf16 %v1462_v62  ;;  %v1855_v5 = vunpack.c.h.bf16 %v1467_v63  ;;  %v1506_v9 = vunpack.c.l.bf16 %v1135_v6  ;;  %v1092_v10 = vunpack.c.l.bf16 %v1499_v7 }
  0x16   :  { %v1856_v11 = vunpack.c.l.bf16 %v1504_v8  ;;  %v1524_v13 = vunpack.c.h.bf16 %v1135_v6  ;;  %v1093_v14 = vunpack.c.h.bf16 %v1499_v7  ;;  %v1857_v17 = vunpack.c.h.bf16 %v1504_v8 }
  0x17   :  { %v1546_v43 = vunpack.c.l.bf16 %v1136_v18  ;;  %v1096_v52 = vunpack.c.l.bf16 %v1143_v25  ;;  %v1859_v61 = vunpack.c.l.bf16 %v1543_v34  ;;  %v1555_v6 = vunpack.c.h.bf16 %v1136_v18 }
  0x18   :  { %v1097_v21 = vunpack.c.h.bf16 %v1143_v25  ;;  %v221_v7 = vmul.f32 %v1088_v1, %v1469_v0  ;;  %v219_v62 = vmul.f32 %v1084_v56, %v1432_v55  ;;  %v217_v53 = vmul.f32 %v1080_v47, %v1395_v46 }
  0x19   :  { %919 = vmatmul.msk.f32.gmra.mxu0 %vm65_vm0, %v1296_v22 }
  0x1a   :  { %935 = vmatmul.msk.f32.gmra.mxu1 %vm65_vm0, %v1860_v23 }
  0x1b   :  { %985 = vmatmul.msk.f32.gmra.mxu2 %vm65_vm0, %v1845_v24  ;;  %v1861_v24 = vunpack.c.h.bf16 %v1543_v34 }
  0x1c   :  { %399 = vrot.lane.b32.xlu0 %v1515_v12, %s1185_s28 }
  0x21   :  { %920 = vmatmul.msk.f32.gmra.mxu0 %vm65_vm0, %v1321_v28 }
  0x22   :  { %936 = vmatmul.msk.f32.gmra.mxu1 %vm65_vm0, %v1862_v29 }
  0x23   :  { %986 = vmatmul.msk.f32.gmra.mxu2 %vm65_vm0, %v1846_v30 }
  0x29   :  { %921 = vmatmul.msk.f32.gmra.mxu0 %vm65_vm0, %v1333_v31 }
  0x2a   :  { %937 = vmatmul.msk.f32.gmra.mxu1 %vm65_vm0, %v1863_v32 }
  0x2b   :  { %987 = vmatmul.msk.f32.gmra.mxu2 %vm65_vm0, %v1847_v33 }
  0x31   :  { %922 = vmatmul.msk.f32.gmra.mxu0 %vm65_vm0, %v1358_v37 }
  0x32   :  { %938 = vmatmul.msk.f32.gmra.mxu1 %vm65_vm0, %v1864_v38 }
  0x33   :  { %988 = vmatmul.msk.f32.gmra.mxu2 %vm65_vm0, %v1848_v39 }
  0x39   :  { %923 = vmatmul.msk.f32.gmra.mxu0 %vm65_vm0, %v1370_v40 }
  0x3a   :  { %939 = vmatmul.msk.f32.gmra.mxu1 %vm65_vm0, %v1077_v41 }
  0x3b   :  { %989 = vmatmul.msk.f32.gmra.mxu2 %vm65_vm0, %v1849_v42 }
  0x41   :  { %924 = vmatmul.msk.f32.gmra.mxu0 %vm65_vm0, %v1395_v46 }
  0x42   :  { %940 = vmatmul.msk.f32.gmra.mxu1 %vm65_vm0, %v1080_v47 }
  0x43   :  { %990 = vmatmul.msk.f32.gmra.mxu2 %vm65_vm0, %v1850_v48 }
  0x49   :  { %925 = vmatmul.msk.f32.gmra.mxu0 %vm65_vm0, %v1407_v49 }
  0x4a   :  { %941 = vmatmul.msk.f32.gmra.mxu1 %vm65_vm0, %v1081_v50 }
  0x4b   :  { %991 = vmatmul.msk.f32.gmra.mxu2 %vm65_vm0, %v1851_v51 }
  0x51   :  { %926 = vmatmul.msk.f32.gmra.mxu0 %vm65_vm0, %v1432_v55 }
  0x52   :  { %942 = vmatmul.msk.f32.gmra.mxu1 %vm65_vm0, %v1084_v56 }
  0x53   :  { %992 = vmatmul.msk.f32.gmra.mxu2 %vm65_vm0, %v1852_v57 }
  0x59   :  { %927 = vmatmul.msk.f32.gmra.mxu0 %vm65_vm0, %v1444_v58 }
  0x5a   :  { %943 = vmatmul.msk.f32.gmra.mxu1 %vm65_vm0, %v1085_v59 }
  0x5b   :  { %993 = vmatmul.msk.f32.gmra.mxu2 %vm65_vm0, %v1853_v60 }
  0x61   :  { %928 = vmatmul.msk.f32.gmra.mxu0 %vm65_vm0, %v1469_v0 }
  0x62   :  { %944 = vmatmul.msk.f32.gmra.mxu1 %vm65_vm0, %v1088_v1 }
  0x63   :  { %994 = vmatmul.msk.f32.gmra.mxu2 %vm65_vm0, %v1854_v2 }
  0x69   :  { %929 = vmatmul.msk.f32.gmra.mxu0 %vm65_vm0, %v1481_v3 }
  0x6a   :  { %945 = vmatmul.msk.f32.gmra.mxu1 %vm65_vm0, %v1089_v4 }
  0x6b   :  { %995 = vmatmul.msk.f32.gmra.mxu2 %vm65_vm0, %v1855_v5 }
  0x71   :  { %930 = vmatmul.msk.f32.gmra.mxu0 %vm65_vm0, %v1506_v9 }
  0x72   :  { %946 = vmatmul.msk.f32.gmra.mxu1 %vm65_vm0, %v1092_v10 }
  0x73   :  { %996 = vmatmul.msk.f32.gmra.mxu2 %vm65_vm0, %v1856_v11 }
  0x79   :  { %931 = vmatmul.msk.f32.gmra.mxu0 %vm65_vm0, %v1524_v13 }
  0x7a   :  { %947 = vmatmul.msk.f32.gmra.mxu1 %vm65_vm0, %v1093_v14 }
  0x7b   :  { %997 = vmatmul.msk.f32.gmra.mxu2 %vm65_vm0, %v1857_v17 }
  0x81   :  { %932 = vmatmul.msk.f32.gmra.mxu0 %vm65_vm0, %v1546_v43 }
  0x82   :  { %948 = vmatmul.msk.f32.gmra.mxu1 %vm65_vm0, %v1096_v52 }
  0x83   :  { %998 = vmatmul.msk.f32.gmra.mxu2 %vm65_vm0, %v1859_v61 }
  0x89   :  { %933 = vmatmul.msk.f32.gmra.mxu0 %vm65_vm0, %v1555_v6 }
  0x8a   :  { %949 = vmatmul.msk.f32.gmra.mxu1 %vm65_vm0, %v1097_v21 }
  0x8b   :  { %999 = vmatmul.msk.f32.gmra.mxu2 %vm65_vm0, %v1861_v24 }
  0x8e   :  { %v131_v30 = vpop.f32.mrf.mxu0 }
  0x8f   :  { %v300_v33 = vpop.f32.mrf.mxu1 }
  0x90   :  { %v1564_v39 = vadd.f32 %v300_v33, %v131_v30 }
  0x96   :  { %v663_v42 = vpop.f32.mrf.mxu2  ;;  %v134_v18 = vpop.f32.mrf.mxu0 }
  0x97   :  { %v1566_v48 = vadd.f32 %v663_v42, %v131_v30  ;;  %v303_v25 = vpop.f32.mrf.mxu1 }
  0x98   :  { %v1568_v51 = vadd.f32 %v303_v25, %v134_v18 }
  0x9e   :  { %v666_v57 = vpop.f32.mrf.mxu2  ;;  %v137_v2 = vpop.f32.mrf.mxu0 }
  0x9f   :  { %v1570_v60 = vadd.f32 %v666_v57, %v134_v18  ;;  %v306_v5 = vpop.f32.mrf.mxu1  ;;  %v226_v18 = vmul.f32 %v1097_v21, %v1555_v6 }
  0xa0   :  { %v1572_v11 = vadd.f32 %v306_v5, %v137_v2 }
  0xa1   :  { %967 = vmatpush.xpose.msk.msra.mxu3 %vm401_vm1, %v226_v18  ;;  %v222_v18 = vmul.f32 %v1089_v4, %v1481_v3 }
  0xa6   :  { %v669_v17 = vpop.f32.mrf.mxu2  ;;  %v140_v61 = vpop.f32.mrf.mxu0 }
  0xa7   :  { %v1574_v20 = vadd.f32 %v669_v17, %v137_v2  ;;  %v309_v33 = vpop.f32.mrf.mxu1 }
  0xa8   :  { %v1576_v23 = vadd.f32 %v309_v33, %v140_v61  ;;  %v225_v33 = vmul.f32 %v1096_v52, %v1546_v43 }
  0xaa   :  { %968 = vmatpush.xpose.msk.msra.mxu3 %vm401_vm1, %v225_v33 }
  0xae   :  { %v672_v30 = vpop.f32.mrf.mxu2  ;;  %v143_v24 = vpop.f32.mrf.mxu0 }
  0xaf   :  { %v1578_v42 = vadd.f32 %v672_v30, %v140_v61  ;;  %v312_v25 = vpop.f32.mrf.mxu1  ;;  %v224_v30 = vmul.f32 %v1093_v14, %v1524_v13 }
  0xb0   :  { %v1580_v29 = vadd.f32 %v312_v25, %v143_v24 }
  0xb1   :  { %969 = vmatpush.xpose.msk.msra.mxu3 %vm401_vm1, %v224_v30 }
  0xb6   :  { %v675_v57 = vpop.f32.mrf.mxu2  ;;  %v146_v5 = vpop.f32.mrf.mxu0 }
  0xb7   :  { %v1583_v32 = vadd.f32 %v675_v57, %v143_v24  ;;  %v315_v2 = vpop.f32.mrf.mxu1  ;;  %v223_v57 = vmul.f32 %v1092_v10, %v1506_v9 }
  0xb8   :  { %v1586_v17 = vadd.f32 %v315_v2, %v146_v5 }
  0xb9   :  { %970 = vmatpush.xpose.msk.msra.mxu3 %vm401_vm1, %v223_v57  ;;  %v218_v57 = vmul.f32 %v1081_v50, %v1407_v49 }
  0xbd   :  { %971 = vmatpush.xpose.msk.msra.mxu3 %vm401_vm1, %v222_v18 }
  0xbe   :  { %v678_v61 = vpop.f32.mrf.mxu2  ;;  %v149_v38 = vpop.f32.mrf.mxu0 }
  0xbf   :  { %v1591_v25 = vadd.f32 %v678_v61, %v146_v5  ;;  %v318_v21 = vpop.f32.mrf.mxu1  ;;  %v220_v61 = vmul.f32 %v1085_v59, %v1444_v58 }
  0xc0   :  { %v1594_v24 = vadd.f32 %v318_v21, %v149_v38 }
  0xc1   :  { %972 = vmatpush.xpose.msk.msra.mxu3 %vm401_vm1, %v221_v7 }
  0xc5   :  { %973 = vmatpush.xpose.msk.msra.mxu3 %vm401_vm1, %v220_v61  ;;  %v1865_v61 = vunpack.c.l.bf16 %v1351_v35  ;;  %v1868_v35 = vunpack.c.h.bf16 %v1543_v34 }
  0xc6   :  { %v681_v52 = vpop.f32.mrf.mxu2  ;;  %v152_v5 = vpop.f32.mrf.mxu0 }
  0xc7   :  { %v1603_v14 = vadd.f32 %v681_v52, %v149_v38  ;;  %v321_v2 = vpop.f32.mrf.mxu1  ;;  %v215_v44 = vmul.f32 %v1865_v61, %v1358_v37  ;;  %v1870_v61 = vunpack.c.l.bf16 %v1543_v34 }
  0xc8   :  { %v1606_v33 = vadd.f32 %v321_v2, %v152_v5  ;;  %v216_v2 = vmul.f32 %v1077_v41, %v1370_v40 }
  0xc9   :  { %974 = vmatpush.xpose.msk.msra.mxu3 %vm401_vm1, %v219_v62 }
  0xcd   :  { %975 = vmatpush.xpose.msk.msra.mxu3 %vm401_vm1, %v218_v57 }
  0xce   :  { %v684_v10 = vpop.f32.mrf.mxu2  ;;  %v155_v38 = vpop.f32.mrf.mxu0 }
  0xcf   :  { %v1615_v4 = vadd.f32 %v684_v10, %v152_v5  ;;  %v324_v30 = vpop.f32.mrf.mxu1 }
  0xd0   :  { %v1618_v21 = vadd.f32 %v324_v30, %v155_v38 }
  0xd1   :  { %976 = vmatpush.xpose.msk.msra.mxu3 %vm401_vm1, %v217_v53  ;;  %v1869_v53 = vunpack.c.h.bf16 %v1271_v15 }
  0xd5   :  { %977 = vmatpush.xpose.msk.msra.mxu3 %vm401_vm1, %v216_v2 }
  0xd6   :  { %v687_v1 = vpop.f32.mrf.mxu2  ;;  %v158_v52 = vpop.f32.mrf.mxu0 }
  0xd7   :  { %v1627_v59 = vadd.f32 %v687_v1, %v155_v38  ;;  %v327_v18 = vpop.f32.mrf.mxu1  ;;  %v1866_v38 = vunpack.c.h.bf16 %v1314_v26  ;;  %v1867_v1 = vunpack.c.l.bf16 %v1314_v26  ;;  %v596_v26 = vmul.f32 %v1870_v61, %v1546_v43 }
  0xd8   :  { %v1630_v5 = vadd.f32 %v327_v18, %v158_v52  ;;  %v1873_v43 = vunpack.c.l.bf16 %v1504_v8  ;;  %v1875_v61 = vunpack.c.l.bf16 %v1467_v63 }
  0xd9   :  { %978 = vmatpush.xpose.msk.msra.mxu3 %vm401_vm1, %v215_v44  ;;  %v214_v41 = vmul.f32 %v1866_v38, %v1333_v31  ;;  %v213_v57 = vmul.f32 %v1867_v1, %v1321_v28 }
  0xdd   :  { %979 = vmatpush.xpose.msk.msra.mxu3 %vm401_vm1, %v214_v41  ;;  %v1872_v41 = vunpack.c.h.bf16 %v1504_v8  ;;  %v1876_v8 = vunpack.c.h.bf16 %v1430_v54 }
  0xde   :  { %v690_v56 = vpop.f32.mrf.mxu2  ;;  %v1641_v7 = vpop.f32.mrf.mxu0 }
  0xdf   :  { %v1639_v50 = vadd.f32 %v690_v56, %v158_v52  ;;  %v1643_v10 = vpop.f32.mrf.mxu1  ;;  %v597_v52 = vmul.f32 %v1868_v35, %v1555_v6  ;;  %v212_v56 = vmul.f32 %v1869_v53, %v1296_v22  ;;  %v1871_v6 = vunpack.c.l.bf16 %v1271_v15 }
  0xe0   :  { %v595_v1 = vmul.f32 %v1872_v41, %v1524_v13  ;;  %v594_v35 = vmul.f32 %v1873_v43, %v1506_v9  ;;  %v1874_v15 = vunpack.c.h.bf16 %v1467_v63  ;;  %v591_v9 = vmul.f32 %v1876_v8, %v1444_v58 }
  0xe1   :  { %980 = vmatpush.xpose.msk.msra.mxu3 %vm401_vm1, %v213_v57  ;;  %1017 = vmatpush.xpose.msk.msrb.mxu0 %vm401_vm1, %v597_v52  ;;  %v211_v38 = vmul.f32 %v1871_v6, %v1284_v19 }
  0xe2   :  { %v593_v53 = vmul.f32 %v1874_v15, %v1481_v3  ;;  %v1877_v3 = vunpack.c.l.bf16 %v1430_v54 }
  0xe5   :  { %981 = vmatpush.xpose.msk.msra.mxu3 %vm401_vm1, %v212_v56  ;;  %1018 = vmatpush.xpose.msk.msrb.mxu0 %vm401_vm1, %v596_v26  ;;  %v592_v26 = vmul.f32 %v1875_v61, %v1469_v0  ;;  %v1878_v0 = vunpack.c.h.bf16 %v1393_v45 }
  0xe6   :  { %v1650_v47 = vpop.f32.mrf.mxu2  ;;  %v1655_v30 = vpop.f32.mrf.mxu0 }
  0xe7   :  { %v333_v62 = vpop.f32.mrf.mxu1 }
  0xe9   :  { %982 = vmatpush.xpose.msk.msra.mxu3 %vm401_vm1, %v211_v38  ;;  %1019 = vmatpush.xpose.msk.msrb.mxu0 %vm401_vm1, %v595_v1  ;;  %v590_v1 = vmul.f32 %v1877_v3, %v1432_v55 }
  0xed   :  { %1020 = vmatpush.xpose.msk.msrb.mxu0 %vm401_vm1, %v594_v35 }
  0xee   :  { %v1666_v18 = vpop.f32.mrf.mxu2  ;;  %v167_v2 = vpop.f32.mrf.mxu0 }
  0xef   :  { %v336_v44 = vpop.f32.mrf.mxu1 }
  0xf0   :  { %v360_v3 = vadd.f32 %v336_v44, %v167_v2 }
  0xf1   :  { %1021 = vmatpush.xpose.msk.msrb.mxu0 %vm401_vm1, %v593_v53  ;;  %v589_v53 = vmul.f32 %v1878_v0, %v1407_v49 }
  0xf5   :  { %1022 = vmatpush.xpose.msk.msrb.mxu0 %vm401_vm1, %v592_v26 }
  0xf6   :  { %v699_v57 = vpop.f32.mrf.mxu2  ;;  %v170_v34 = vpop.f32.mrf.mxu0 }
  0xf7   :  { %v339_v52 = vpop.f32.mrf.mxu1 }
  0xf8   :  { %v361_v58 = vadd.f32 %v339_v52, %v170_v34 }
  0xf9   :  { %1023 = vmatpush.xpose.msk.msrb.mxu0 %vm401_vm1, %v591_v9 }
  0xfd   :  { %1024 = vmatpush.xpose.msk.msrb.mxu0 %vm401_vm1, %v590_v1  ;;  %v380_v1 = vadd.f32 %v1515_v12, %v361_v58 }
  0xfe   :  { %v702_v13 = vpop.f32.mrf.mxu2  ;;  %v173_v56 = vpop.f32.mrf.mxu0 }
  0xff   :  { %v342_v6 = vpop.f32.mrf.mxu1  ;;  %v724_v52 = vadd.f32 %v702_v13, %v170_v34  ;;  %v396_v44 = vmax.f32 %v380_v1, 0.0  ;;  %v1885_v1 = vunpack.c.l.bf16 %v1276_v16 }
 0x100   :  { %v362_v35 = vadd.f32 %v342_v6, %v173_v56  ;;  %v1879_v6 = vunpack.c.l.bf16 %v1393_v45  ;;  %v359_v45 = vadd.f32 %v333_v62, %v1655_v30 }
 0x101   :  { %1025 = vmatpush.xpose.msk.msrb.mxu0 %vm401_vm1, %v589_v53  ;;  %v740_v34 = vadd.f32 %v1515_v12, %v724_v52 }
 0x102   :  { %v381_v61 = vadd.f32 %v1515_v12, %v362_v35  ;;  %v588_v9 = vmul.f32 %v1879_v6, %v1395_v46  ;;  %v379_v46 = vadd.f32 %v1515_v12, %v360_v3  ;;  %v378_v62 = vadd.f32 %v1515_v12, %v359_v45 }
 0x103   :  { %v756_v58 = vmax.f32 %v740_v34, 0.0 }
 0x104   :  { %v395_v53 = vmax.f32 %v379_v46, 0.0  ;;  %v732_v46 = vadd.f32 %v1515_v12, %v1591_v25  ;;  %v730_v25 = vadd.f32 %v1515_v12, %v1578_v42  ;;  %v728_v42 = vadd.f32 %v1515_v12, %v1570_v60 }
 0x105   :  { %1026 = vmatpush.xpose.msk.msrb.mxu0 %vm401_vm1, %v588_v9 }
 0x106   :  { %v705_v38 = vpop.f32.mrf.mxu2  ;;  %v176_v41 = vpop.f32.mrf.mxu0  ;;  %v748_v34 = vmax.f32 %v732_v46, 0.0 }
 0x107   :  { %v345_v43 = vpop.f32.mrf.mxu1  ;;  %v725_v54 = vadd.f32 %v705_v38, %v173_v56  ;;  %v1880_v56 = vunpack.c.h.bf16 %v1356_v36 }
 0x108   :  { %v363_v15 = vadd.f32 %v345_v43, %v176_v41  ;;  %v397_v43 = vmax.f32 %v381_v61, 0.0  ;;  %v394_v61 = vmax.f32 %v378_v62, 0.0  ;;  %v746_v62 = vmax.f32 %v730_v25, 0.0 }
 0x109   :  { %v741_v35 = vadd.f32 %v1515_v12, %v725_v54  ;;  %v587_v38 = vmul.f32 %v1880_v56, %v1370_v40  ;;  %v358_v40 = vadd.f32 %v1643_v10, %v1641_v7  ;;  %v24_v56 = vld [vmem:[%s1842_s5] sm:$0x1]  ;;  %s907_s5 = sshll.u32 %s1187_s2, 4  ;;  %s908_s5 = int_to_ptr.vmem [resolvable:$true] %s907_s5 }
 0x10a   :  { %v382_v63 = vadd.f32 %v1515_v12, %v363_v15 }
 0x10b   :  { %1027 = vmatpush.xpose.msk.msrb.mxu0 %vm401_vm1, %v587_v38  ;;  %v757_v13 = vmax.f32 %v741_v35, 0.0  ;;  %v377_v10 = vadd.f32 %v1515_v12, %v358_v40 }
 0x10c   :  { %v398_v26 = vmax.f32 %v382_v63, 0.0  ;;  %v1881_v63 = vunpack.c.l.bf16 %v1356_v36  ;;  %v1882_v36 = vunpack.c.h.bf16 %v1319_v27 }
 0x10e   :  { %v708_v8 = vpop.f32.mrf.mxu2  ;;  %950 = vmatpush.xpose.msk.msrb.mxu1 %vm401_vm1, %v398_v26  ;;  %v586_v0 = vmul.f32 %v1881_v63, %v1358_v37  ;;  %v585_v37 = vmul.f32 %v1882_v36, %v1333_v31  ;;  %v721_v26 = vadd.f32 %v1650_v47, %v1641_v7  ;;  %v376_v31 = vadd.f32 %v1515_v12, %v1630_v5 }
 0x10f   :  { %v726_v55 = vadd.f32 %v708_v8, %v176_v41  ;;  %v723_v41 = vadd.f32 %v699_v57, %v167_v2  ;;  %v722_v2 = vadd.f32 %v1666_v18, %v1655_v30  ;;  %v1883_v8 = vunpack.c.l.bf16 %v1319_v27 }
 0x110   :  { %1028 = vmatpush.xpose.msk.msrb.mxu0 %vm401_vm1, %v586_v0  ;;  %v737_v6 = vadd.f32 %v1515_v12, %v721_v26  ;;  %v1884_v47 = vunpack.c.h.bf16 %v1276_v16  ;;  %v375_v27 = vadd.f32 %v1515_v12, %v1618_v21  ;;  %v736_v5 = vadd.f32 %v1515_v12, %v1639_v50  ;;  %v473_v21 = vpop.permute.xlu0 %472 }
 0x111   :  { %v742_v49 = vadd.f32 %v1515_v12, %v726_v55  ;;  %v739_v57 = vadd.f32 %v1515_v12, %v723_v41  ;;  %v738_v30 = vadd.f32 %v1515_v12, %v722_v2  ;;  %v584_v54 = vmul.f32 %v1883_v8, %v1321_v28  ;;  %983 = vmatmul.msk.f32.vlgmr.msra.gmra.mxu3 %vm401_vm1, %v473_v21 }
 0x112   :  { %951 = vmatpush.xpose.msk.msrb.mxu1 %vm401_vm1, %v397_v43  ;;  %v393_v55 = vmax.f32 %v377_v10, 0.0  ;;  %v583_v9 = vmul.f32 %v1884_v47, %v1296_v22  ;;  %v392_v28 = vmax.f32 %v376_v31, 0.0  ;;  %v753_v3 = vmax.f32 %v737_v6, 0.0 }
 0x113   :  { %v758_v15 = vmax.f32 %v742_v49, 0.0  ;;  %v755_v18 = vmax.f32 %v739_v57, 0.0  ;;  %v754_v7 = vmax.f32 %v738_v30, 0.0  ;;  %v582_v43 = vmul.f32 %v1885_v1, %v1284_v19 }
 0x114   :  { %1029 = vmatpush.xpose.msk.msrb.mxu0 %vm401_vm1, %v585_v37  ;;  %v374_v22 = vadd.f32 %v1515_v12, %v1606_v33  ;;  %v391_v49 = vmax.f32 %v375_v27, 0.0  ;;  %v735_v50 = vadd.f32 %v1515_v12, %v1627_v59  ;;  %v752_v52 = vmax.f32 %v736_v5, 0.0 }
 0x115   :  { %1000 = vmatpush.xpose.msk.msrb.mxu3 %vm401_vm1, %v758_v15  ;;  %v373_v16 = vadd.f32 %v1515_v12, %v1594_v24  ;;  %v734_v33 = vadd.f32 %v1515_v12, %v1615_v4  ;;  %v372_v59 = vadd.f32 %v1515_v12, %v1586_v17  ;;  %v733_v24 = vadd.f32 %v1515_v12, %v1603_v14 }
 0x116   :  { %952 = vmatpush.xpose.msk.msrb.mxu1 %vm401_vm1, %v396_v44  ;;  %v390_v19 = vmax.f32 %v374_v22, 0.0  ;;  %v751_v35 = vmax.f32 %v735_v50, 0.0  ;;  %v371_v4 = vadd.f32 %v1515_v12, %v1580_v29  ;;  %v1186_v17 = vmov 96  }
 0x117   :  { %v389_v15 = vmax.f32 %v373_v16, 0.0  ;;  %v750_v38 = vmax.f32 %v734_v33, 0.0  ;;  %v388_v45 = vmax.f32 %v372_v59, 0.0  ;;  %1155 = vset.pattern.permute.xlu1 %v1186_v17  ;;  %1156 = vset.pattern.permute.xlu0 %v1186_v17  ;;  %v749_v44 = vmax.f32 %v733_v24, 0.0 }
 0x118   :  { %1030 = vmatpush.xpose.msk.msrb.mxu0 %vm401_vm1, %v584_v54  ;;  %545 = vperm.xlu1 %1155, %v24_v56   ;;  %v370_v14 = vadd.f32 %v1515_v12, %v1576_v23  ;;  %v387_v41 = vmax.f32 %v371_v4, 0.0  ;;  %v731_v29 = vadd.f32 %v1515_v12, %v1583_v32  ;;  %v368_v23 = vadd.f32 %v1515_v12, %v1568_v51 }
 0x119   :  { %1001 = vmatpush.xpose.msk.msrb.mxu3 %vm401_vm1, %v757_v13  ;;  %v369_v13 = vadd.f32 %v1515_v12, %v1572_v11  ;;  %v729_v32 = vadd.f32 %v1515_v12, %v1574_v20  ;;  %v367_v11 = vadd.f32 %v1515_v12, %v1564_v39  ;;  %v727_v20 = vadd.f32 %v1515_v12, %v1566_v48 }
 0x11a   :  { %953 = vmatpush.xpose.msk.msrb.mxu1 %vm401_vm1, %v395_v53  ;;  %v386_v63 = vmax.f32 %v370_v14, 0.0  ;;  %v747_v0 = vmax.f32 %v731_v29, 0.0  ;;  %v384_v53 = vmax.f32 %v368_v23, 0.0  ;;  %v744_v57 = vmax.f32 %v728_v42, 0.0 }
 0x11b   :  { %v385_v40 = vmax.f32 %v369_v13, 0.0  ;;  %v745_v2 = vmax.f32 %v729_v32, 0.0  ;;  %v383_v51 = vmax.f32 %v367_v11, 0.0  ;;  %v743_v39 = vmax.f32 %v727_v20, 0.0 }
 0x11c   :  { %1031 = vmatpush.xpose.msk.msrb.mxu0 %vm401_vm1, %v583_v9 }
 0x11d   :  { %1002 = vmatpush.xpose.msk.msrb.mxu3 %vm401_vm1, %v756_v58  ;;  %v400_v58 = vpop.permute.xlu0 %399 }
 0x11e   :  { %954 = vmatpush.xpose.msk.msrb.mxu1 %vm401_vm1, %v394_v61 }
 0x120   :  { %1032 = vmatpush.xpose.msk.msrb.mxu0 %vm401_vm1, %v582_v43 }
 0x121   :  { %1003 = vmatpush.xpose.msk.msrb.mxu3 %vm401_vm1, %v755_v18 }
 0x122   :  { %955 = vmatpush.xpose.msk.msrb.mxu1 %vm401_vm1, %v393_v55 }
 0x123   :  { %1033 = vmatmul.msk.f32.vlgmr.msrb.gmra.mxu0 %vm401_vm1, %v473_v21 }
 0x125   :  { %1004 = vmatpush.xpose.msk.msrb.mxu3 %vm401_vm1, %v754_v7 }
 0x126   :  { %956 = vmatpush.xpose.msk.msrb.mxu1 %vm401_vm1, %v392_v28 }
 0x129   :  { %1005 = vmatpush.xpose.msk.msrb.mxu3 %vm401_vm1, %v753_v3 }
 0x12a   :  { %957 = vmatpush.xpose.msk.msrb.mxu1 %vm401_vm1, %v391_v49 }
 0x12d   :  { %1006 = vmatpush.xpose.msk.msrb.mxu3 %vm401_vm1, %v752_v52 }
 0x12e   :  { %958 = vmatpush.xpose.msk.msrb.mxu1 %vm401_vm1, %v390_v19 }
 0x131   :  { %1007 = vmatpush.xpose.msk.msrb.mxu3 %vm401_vm1, %v751_v35 }
 0x132   :  { %959 = vmatpush.xpose.msk.msrb.mxu1 %vm401_vm1, %v389_v15 }
 0x135   :  { %1008 = vmatpush.xpose.msk.msrb.mxu3 %vm401_vm1, %v750_v38 }
 0x136   :  { %960 = vmatpush.xpose.msk.msrb.mxu1 %vm401_vm1, %v388_v45 }
 0x139   :  { %1009 = vmatpush.xpose.msk.msrb.mxu3 %vm401_vm1, %v749_v44 }
 0x13a   :  { %961 = vmatpush.xpose.msk.msrb.mxu1 %vm401_vm1, %v387_v41 }
 0x13d   :  { %1010 = vmatpush.xpose.msk.msrb.mxu3 %vm401_vm1, %v748_v34 }
 0x13e   :  { %962 = vmatpush.xpose.msk.msrb.mxu1 %vm401_vm1, %v386_v63 }
 0x141   :  { %1011 = vmatpush.xpose.msk.msrb.mxu3 %vm401_vm1, %v747_v0 }
 0x142   :  { %963 = vmatpush.xpose.msk.msrb.mxu1 %vm401_vm1, %v385_v40 }
 0x145   :  { %1012 = vmatpush.xpose.msk.msrb.mxu3 %vm401_vm1, %v746_v62 }
 0x146   :  { %964 = vmatpush.xpose.msk.msrb.mxu1 %vm401_vm1, %v384_v53 }
 0x149   :  { %1013 = vmatpush.xpose.msk.msrb.mxu3 %vm401_vm1, %v745_v2 }
 0x14a   :  { %965 = vmatpush.xpose.msk.msrb.mxu1 %vm401_vm1, %v383_v51 }
 0x14d   :  { %1014 = vmatpush.xpose.msk.msrb.mxu3 %vm401_vm1, %v744_v57  ;;  %966 = vmatmul.msk.f32.vlgmr.msrb.gmra.mxu1 %vm401_vm1, %v400_v58 }
 0x151   :  { %1015 = vmatpush.xpose.msk.msrb.mxu3 %vm401_vm1, %v743_v39 }
 0x154   :  { %1016 = vmatmul.msk.f32.vlgmr.msrb.gmra.mxu3 %vm401_vm1, %v400_v58 }
 0x18a   :  { %v546_v36 = vpop.permute.xlu1 %545 }
 0x18b   :  { %v548_v26 = vperm.slane %v546_v36, 0 }
 0x194   :  { %v541_v60 = vpop.f32.mrf.mxu3 }
 0x1a0   :  { %v892_v61 = vpop.f32.mrf.mxu0 }
 0x1ca   :  { %v469_v37 = vpop.f32.mrf.mxu1 }
 0x1cb   :  { %v542_v12 = vadd.f32 %v541_v60, %v469_v37 }
 0x1cd   :  { %v549_v8 = vadd.f32 %v548_v26, %v542_v12 }
 0x1d7   :  { %v824_v10 = vpop.f32.mrf.mxu3 }
 0x1d8   :  { %v893_v48 = vadd.f32 %v892_v61, %v824_v10 }
 0x1da   :  { %v895_v30 = vadd.f32 %v893_v48, %v548_v26 }
 0x1dc   :  { %v897_v18 = vrot.slane %v895_v30, 7 }
 0x1de   :  { %v900_v54 = vsel %vm899_vm2, %v549_v8, %v897_v18 }
 0x1df   :  { %901 = vst [vmem:[#allocation2] sm:$0x3] %v900_v54 }
 0x1e0   :  { %912 = dma.vmem_to_hbm [thread:$0]  %s908_s5, 32, %s910_s7, [#allocation3]  }
 0x1e1   :  { %1182 = dma.done.wait [#allocation3], 32  }
 0x1e2   :  { %1183 = vsyncadd [#allocation3], 4294967264 }
 0x1e3   :  { %917 = vsyncpa [#allocation3], 1 }

</bundles_post_ra>
